<compile_context>
chip_gen: v7x
topology: tpu7x:2x2x1
jax: 0.10.0
libtpu: 0.0.40
codegen_flags: <defaults>
</compile_context>

<pallas_src>
import math

import jax
import jax.numpy as jnp
from jax import lax
from jax.experimental import pallas as pl
from jax.experimental.pallas import tpu as pltpu

_ROW_TILE = 4096          # max packed rows per grid step (f32 out block ~2 MiB, VMEM-safe on v7x)
_SINGLE_BLOCK_ROWS = 1024  # at or below this many packed rows: one full block, grid=(1,)
_FAST_PATH_ROWS = 1024     # below this many logical rows: pure-jnp fused path (unless forced)


def _round_up(n, m):
    return ((n + m - 1) // m) * m


def _make_sinusoidal_kernel(pack, dims, half, log_min, log_step, out_dtype):
    W = pack * dims
    two_pi = 2.0 * math.pi
    half_pi = 0.5 * math.pi

    def kernel(x_ref, out_ref):
        xp = x_ref[...]                                      # (tile, pack) f32
        lane = lax.broadcasted_iota(jnp.int32, (1, W), 1)    # 0..W-1
        j = lane % dims                                      # position inside one embedding
        # Frequency / phase tables rebuilt from Python-scalar constants (no HBM input):
        #   lanes [0, half)      -> sin(w_i * x)   (phase 0)
        #   lanes [half, dims)   -> cos(w_i * x) = sin(w_i * x + pi/2)
        freq_idx = (j % half).astype(jnp.float32)
        w = two_pi * jnp.exp(log_min + log_step * freq_idx)              # (1, W)
        phase = jnp.where(j >= half, jnp.float32(half_pi), jnp.float32(0.0))
        # Exact-f32 lane expansion: x_exp[r, l] = xp[r, l // dims] via pack-1 VPU selects.
        x_exp = xp[:, 0:1]
        for k in range(1, pack):
            x_exp = jnp.where(lane >= k * dims, xp[:, k:k + 1], x_exp)
        # Single full-width EUP sin + one lane-dense unmasked store.
        out_ref[...] = jnp.sin(x_exp * w + phase).astype(out_dtype)

    return kernel


def sinusoidal_embedding(x,
                         embedding_min_frequency=1.0,
                         embedding_max_frequency=1000.0,
                         embedding_dims=32,
                         out_dtype=jnp.float32,
                         force_pallas=False):
    """Pallas implementation of SinusoidalEmbedding.forward.

    x: array whose last dim is 1 (e.g. (B, 1, 1, 1)). Returns the same leading dims with
    last dim == embedding_dims, i.e. [sin(w*x) | cos(w*x)] along the last axis.
    """
    assert embedding_dims % 2 == 0, "embedding_dims must be even"
    assert x.shape[-1] == 1, "SinusoidalEmbedding expects trailing dim of size 1"
    half = embedding_dims // 2

    # Trace-time constants matching torch.linspace(log(min), log(max), half).
    log_min = math.log(embedding_min_frequency)
    log_max = math.log(embedding_max_frequency)
    log_step = (log_max - log_min) / (half - 1) if half > 1 else 0.0

    lead = x.shape[:-1]
    B = 1
    for d in lead:
        B *= d

    if not force_pallas and B < _FAST_PATH_ROWS:
        # Small-batch fast path: tiny problem, let XLA fuse it into the surrounding graph.
        i = jnp.arange(half, dtype=jnp.float32)
        w = (2.0 * math.pi) * jnp.exp(log_min + log_step * i)
        ang = x.astype(jnp.float32) * w
        emb = jnp.concatenate([jnp.sin(ang), jnp.cos(ang)], axis=-1)
        return emb.astype(out_dtype)

    # Pack factor: pack logical rows per physical row so the lane axis is >=128-dense.
    pack = (128 // embedding_dims) if (embedding_dims <= 128 and
                                       128 % embedding_dims == 0) else 1
    W = pack * embedding_dims

    xf = x.reshape(B).astype(jnp.float32)
    B_pad = _round_up(B, pack * 8)           # keep packed-row count a multiple of 8 (sublanes)
    if B_pad != B:
        xf = jnp.pad(xf, (0, B_pad - B))
    rows = B_pad // pack
    x2d = xf.reshape(rows, pack)

    if rows <= _SINGLE_BLOCK_ROWS:
        tile = rows                           # single full block
    else:
        # At least 2 grid steps (shards across v7x's 2 TensorCores), at most _ROW_TILE rows.
        tile = min(_ROW_TILE, _round_up(pl.cdiv(rows, 2), 8))
    grid = (pl.cdiv(rows, tile),)

    kernel = _make_sinusoidal_kernel(pack, embedding_dims, half, log_min, log_step, out_dtype)

    out2d = pl.pallas_call(
        kernel,
        out_shape=jax.ShapeDtypeStruct((rows, W), out_dtype),
        grid=grid,
        in_specs=[
            pl.BlockSpec((tile, pack), lambda i: (i, 0),
                         memory_space=pltpu.MemorySpace.VMEM),
        ],
        out_specs=pl.BlockSpec((tile, W), lambda i: (i, 0),
                               memory_space=pltpu.MemorySpace.VMEM),
        compiler_params=pltpu.CompilerParams(dimension_semantics=("parallel",)),
    )(x2d)

    # (rows, pack*dims) row-major is byte-identical to (B_pad, dims); slice away the pad rows.
    out = out2d.reshape(B_pad, embedding_dims)[:B]
    return out.reshape(*lead, embedding_dims)


def _reference(x, embedding_min_frequency=1.0, embedding_max_frequency=1000.0,
               embedding_dims=32):
    """Pure-jnp reference using the identical f32 frequency construction."""
    half = embedding_dims // 2
    log_min = math.log(embedding_min_frequency)
    log_max = math.log(embedding_max_frequency)
    log_step = (log_max - log_min) / (half - 1) if half > 1 else 0.0
    i = jnp.arange(half, dtype=jnp.float32)
    w = (2.0 * math.pi) * jnp.exp(log_min + log_step * i)
    ang = x.astype(jnp.float32) * w
    return jnp.concatenate([jnp.sin(ang), jnp.cos(ang)], axis=-1)


if __name__ == "__main__":
    key = jax.random.PRNGKey(0)
    k1, k2, k3 = jax.random.split(key, 3)

    # 1) Typical diffusion usage: noise variance of shape (batch, 1, 1, 1); force the kernel path.
    x = jax.random.uniform(k1, (2, 1, 1, 1), dtype=jnp.float32)
    out = jax.block_until_ready(sinusoidal_embedding(x, embedding_dims=32, force_pallas=True))
    ref = _reference(x, embedding_dims=32)
    assert out.shape == (2, 1, 1, 32), out.shape
    # cos(t)=sin(t+pi/2) differs from jnp.cos(t) by <~5e-4 at angles up to 2*pi*1e3.
    assert jnp.allclose(out, ref, atol=2e-3, rtol=0.0), "small-batch mismatch vs reference"
    s, c = out[..., :16], out[..., 16:]
    assert jnp.allclose(s * s + c * c, 1.0, atol=1e-3), "sin^2 + cos^2 != 1"

    # 2) Non-multiple-of-pack batch exercises the wrapper-side padding + slicing.
    x_odd = jax.random.uniform(k2, (10, 1), dtype=jnp.float32)
    out_odd = jax.block_until_ready(sinusoidal_embedding(x_odd, embedding_dims=32,
                                                         force_pallas=True))
    assert out_odd.shape == (10, 32), out_odd.shape
    assert jnp.allclose(out_odd, _reference(x_odd, embedding_dims=32), atol=2e-3, rtol=0.0)

    # 3) Larger batch exercises the multi-step parallel grid (>=2 blocks for v7x's 2 TCs).
    x_large = jax.random.uniform(k3, (8192, 1, 1, 1), dtype=jnp.float32)
    out_large = jax.block_until_ready(sinusoidal_embedding(x_large, embedding_dims=32))
    assert out_large.shape == (8192, 1, 1, 32), out_large.shape
    assert jnp.allclose(out_large, _reference(x_large, embedding_dims=32), atol=2e-3, rtol=0.0)

    # 4) bf16 output path (narrow store only; math stays f32).
    out_bf16 = jax.block_until_ready(
        sinusoidal_embedding(x, embedding_dims=32, out_dtype=jnp.bfloat16, force_pallas=True))
    assert out_bf16.dtype == jnp.bfloat16
    assert jnp.allclose(out_bf16.astype(jnp.float32), ref, atol=2e-2, rtol=0.0)

    # 5) Small-batch fast path (no kernel launch) stays numerically identical.
    x_small = jax.random.uniform(k1, (4, 1, 1, 1), dtype=jnp.float32)
    out_fast = jax.block_until_ready(sinusoidal_embedding(x_small, embedding_dims=32))
    assert jnp.allclose(out_fast, _reference(x_small, embedding_dims=32), atol=1e-5)

    print("KERNEL_OK")
</pallas_src>

<mosaic_0001>
module attributes {stable_mosaic.version = 11 : i64} {
  func.func @kernel(%arg0: i32, %arg1: memref<8x4xf32, #tpu.memory_space<vmem>>, %arg2: memref<8x128xf32, #tpu.memory_space<vmem>>) attributes {dimension_semantics = [#tpu.dimension_semantics<parallel>], iteration_bounds = array<i64: 1>, scalar_prefetch = 0 : i64, scratch_operands = 0 : i64, tpu.core_type = #tpu.core_type<tc>, window_params = [{transform_indices = @transform_0, window_bounds = array<i64: 8, 4>}, {transform_indices = @transform_1, window_bounds = array<i64: 8, 128>}]} {
    %c0 = arith.constant 0 : index
    %c0_0 = arith.constant 0 : index
    %0 = vector.load %arg1[%c0, %c0_0] : memref<8x4xf32, #tpu.memory_space<vmem>>, vector<8x4xf32>
    %1 = tpu.iota {dimensions = array<i32: 1>} : vector<1x128xi32>
    %c32_i32 = arith.constant 32 : i32
    %c0_i32 = arith.constant 0 : i32
    %2 = arith.cmpi eq, %c32_i32, %c0_i32 : i32
    %c1_i32 = arith.constant 1 : i32
    %3 = arith.select %2, %c1_i32, %c32_i32 : i32
    %4 = vector.broadcast %3 : i32 to vector<1x128xi32>
    %5 = arith.remsi %1, %4 : vector<1x128xi32>
    %c0_i32_1 = arith.constant 0 : i32
    %6 = vector.broadcast %c0_i32_1 : i32 to vector<1x128xi32>
    %7 = arith.cmpi ne, %5, %6 : vector<1x128xi32>
    %c0_i32_2 = arith.constant 0 : i32
    %8 = vector.broadcast %c0_i32_2 : i32 to vector<1x128xi32>
    %9 = arith.cmpi slt, %5, %8 : vector<1x128xi32>
    %c0_i32_3 = arith.constant 0 : i32
    %10 = arith.cmpi slt, %3, %c0_i32_3 : i32
    %11 = vector.broadcast %10 : i1 to vector<1x128xi1>
    %12 = vector.broadcast %11 : vector<1x128xi1> to vector<1x128xi1>
    %13 = arith.xori %9, %12 : vector<1x128xi1>
    %14 = arith.andi %13, %7 : vector<1x128xi1>
    %15 = vector.broadcast %3 : i32 to vector<1x128xi32>
    %16 = arith.addi %5, %15 : vector<1x128xi32>
    %17 = arith.select %14, %16, %5 : vector<1x128xi1>, vector<1x128xi32>
    %c16_i32 = arith.constant 16 : i32
    %c0_i32_4 = arith.constant 0 : i32
    %18 = arith.cmpi eq, %c16_i32, %c0_i32_4 : i32
    %c1_i32_5 = arith.constant 1 : i32
    %19 = arith.select %18, %c1_i32_5, %c16_i32 : i32
    %20 = vector.broadcast %19 : i32 to vector<1x128xi32>
    %21 = arith.remsi %17, %20 : vector<1x128xi32>
    %c0_i32_6 = arith.constant 0 : i32
    %22 = vector.broadcast %c0_i32_6 : i32 to vector<1x128xi32>
    %23 = arith.cmpi ne, %21, %22 : vector<1x128xi32>
    %c0_i32_7 = arith.constant 0 : i32
    %24 = vector.broadcast %c0_i32_7 : i32 to vector<1x128xi32>
    %25 = arith.cmpi slt, %21, %24 : vector<1x128xi32>
    %c0_i32_8 = arith.constant 0 : i32
    %26 = arith.cmpi slt, %19, %c0_i32_8 : i32
    %27 = vector.broadcast %26 : i1 to vector<1x128xi1>
    %28 = vector.broadcast %27 : vector<1x128xi1> to vector<1x128xi1>
    %29 = arith.xori %25, %28 : vector<1x128xi1>
    %30 = arith.andi %29, %23 : vector<1x128xi1>
    %31 = vector.broadcast %19 : i32 to vector<1x128xi32>
    %32 = arith.addi %21, %31 : vector<1x128xi32>
    %33 = arith.select %30, %32, %21 : vector<1x128xi1>, vector<1x128xi32>
    %34 = arith.sitofp %33 : vector<1x128xi32> to vector<1x128xf32>
    %cst = arith.constant 0.460517019 : f32
    %35 = vector.broadcast %cst : f32 to vector<1x128xf32>
    %36 = arith.mulf %35, %34 : vector<1x128xf32>
    %cst_9 = arith.constant 0.000000e+00 : f32
    %37 = vector.broadcast %cst_9 : f32 to vector<1x128xf32>
    %38 = arith.addf %37, %36 : vector<1x128xf32>
    %39 = math.exp %38 : vector<1x128xf32>
    %cst_10 = arith.constant 6.28318548 : f32
    %40 = vector.broadcast %cst_10 : f32 to vector<1x128xf32>
    %41 = arith.mulf %40, %39 : vector<1x128xf32>
    %c16_i32_11 = arith.constant 16 : i32
    %42 = vector.broadcast %c16_i32_11 : i32 to vector<1x128xi32>
    %43 = arith.cmpi sge, %17, %42 : vector<1x128xi32>
    %cst_12 = arith.constant 1.57079637 : f32
    %cst_13 = arith.constant 0.000000e+00 : f32
    %44 = vector.broadcast %cst_12 : f32 to vector<1x128xf32>
    %45 = vector.broadcast %cst_13 : f32 to vector<1x128xf32>
    %46 = arith.select %43, %44, %45 : vector<1x128xi1>, vector<1x128xf32>
    %47 = vector.extract_strided_slice %0 {offsets = [0, 0], sizes = [8, 1], strides = [1, 1]} : vector<8x4xf32> to vector<8x1xf32>
    %c32_i32_14 = arith.constant 32 : i32
    %48 = vector.broadcast %c32_i32_14 : i32 to vector<1x128xi32>
    %49 = arith.cmpi sge, %1, %48 : vector<1x128xi32>
    %50 = vector.extract_strided_slice %0 {offsets = [0, 1], sizes = [8, 1], strides = [1, 1]} : vector<8x4xf32> to vector<8x1xf32>
    %51 = vector.shape_cast %49 : vector<1x128xi1> to vector<1x128xi1>
    %52 = vector.broadcast %51 : vector<1x128xi1> to vector<8x128xi1>
    %53 = vector.shape_cast %50 : vector<8x1xf32> to vector<8x1xf32>
    %54 = vector.broadcast %53 : vector<8x1xf32> to vector<8x128xf32>
    %55 = vector.shape_cast %47 : vector<8x1xf32> to vector<8x1xf32>
    %56 = vector.broadcast %55 : vector<8x1xf32> to vector<8x128xf32>
    %57 = arith.select %52, %54, %56 : vector<8x128xi1>, vector<8x128xf32>
    %c64_i32 = arith.constant 64 : i32
    %58 = vector.broadcast %c64_i32 : i32 to vector<1x128xi32>
    %59 = arith.cmpi sge, %1, %58 : vector<1x128xi32>
    %60 = vector.extract_strided_slice %0 {offsets = [0, 2], sizes = [8, 1], strides = [1, 1]} : vector<8x4xf32> to vector<8x1xf32>
    %61 = vector.shape_cast %59 : vector<1x128xi1> to vector<1x128xi1>
    %62 = vector.broadcast %61 : vector<1x128xi1> to vector<8x128xi1>
    %63 = vector.shape_cast %60 : vector<8x1xf32> to vector<8x1xf32>
    %64 = vector.broadcast %63 : vector<8x1xf32> to vector<8x128xf32>
    %65 = arith.select %62, %64, %57 : vector<8x128xi1>, vector<8x128xf32>
    %c96_i32 = arith.constant 96 : i32
    %66 = vector.broadcast %c96_i32 : i32 to vector<1x128xi32>
    %67 = arith.cmpi sge, %1, %66 : vector<1x128xi32>
    %68 = vector.extract_strided_slice %0 {offsets = [0, 3], sizes = [8, 1], strides = [1, 1]} : vector<8x4xf32> to vector<8x1xf32>
    %69 = vector.shape_cast %67 : vector<1x128xi1> to vector<1x128xi1>
    %70 = vector.broadcast %69 : vector<1x128xi1> to vector<8x128xi1>
    %71 = vector.shape_cast %68 : vector<8x1xf32> to vector<8x1xf32>
    %72 = vector.broadcast %71 : vector<8x1xf32> to vector<8x128xf32>
    %73 = arith.select %70, %72, %65 : vector<8x128xi1>, vector<8x128xf32>
    %74 = vector.broadcast %41 : vector<1x128xf32> to vector<8x128xf32>
    %75 = arith.mulf %73, %74 : vector<8x128xf32>
    %76 = vector.broadcast %46 : vector<1x128xf32> to vector<8x128xf32>
    %77 = arith.addf %75, %76 : vector<8x128xf32>
    %78 = math.sin %77 : vector<8x128xf32>
    %c0_15 = arith.constant 0 : index
    %c0_16 = arith.constant 0 : index
    %79 = vector.load %arg2[%c0_15, %c0_16] : memref<8x128xf32, #tpu.memory_space<vmem>>, vector<8x128xf32>
    tpu.vector_store %arg2[%c0_15, %c0_16], %78 {strides = array<i32>} : memref<8x128xf32, #tpu.memory_space<vmem>>, vector<8x128xf32>,
    return
  }
  func.func @transform_0(%arg0: i32) -> (i32, i32) {
    %c0_i32 = arith.constant 0 : i32
    %c0_i32_0 = arith.constant 0 : i32
    return %arg0, %c0_i32 : i32, i32
  }
  func.func @transform_1(%arg0: i32) -> (i32, i32) {
    %c0_i32 = arith.constant 0 : i32
    %c0_i32_0 = arith.constant 0 : i32
    return %arg0, %c0_i32 : i32, i32
  }
}

</mosaic_0001>

<bundles_post_ra>
// kernel: tpu_custom_call.1
= control target key start
LH: loop header
LB: loop body
LE: loop exit
PB: predicated region body
PF: predicated region fallthrough
CT: control target
= control target key end

     0   :  { %v249_v1 = vmov 1   ;;  %v250_v2 = vmov 2   ;;  %s307_s0 = inlined_call_operand.vmem [shape: f32[8,4], index: 0, kind: input, shape index: {}]   ;;  %s308_s1 = inlined_call_operand.hbm [shape: f32[8,128], index: 1, kind: output, shape index: {}]  }
   0x1   :  { %v9_v0 = vld [vmem:[%s307_s0] sm:$0xff]  ;;  %214 = vset.pattern.permute.xlu0 %v249_v1  ;;  %216 = vset.pattern.permute.xlu1 %v250_v2 }
   0x2   :  { %6 = vsyncpa [#allocation3], 0  ;;  %49 = vperm.xlu0 %214, %v9_v0   ;;  %61 = vperm.xlu1 %216, %v9_v0   ;;  %v251_v3 = vmov 0   ;;  %v252_v4 = vmov 3   ;;  %v10_v5 = vlaneseq  ;;  %v253_v20 = vmov 0.0   ;;  %s260_s0 = smov [#allocation2]  }
   0x3   :  { %v254_v35 = vmov 683565275   ;;  %v255_v37 = vmov 2475754826   ;;  %v256_v40 = vmov 2131351028  }
   0x4   :  { %v11_v6 = vand.u32 127, %v10_v5  ;;  %v257_v43 = vmov 2102212464   ;;  %v258_v46 = vmov 920167782   ;;  %s186_s8 = sshll.u32 %s260_s0, 4  ;;  %s187_s8 = int_to_ptr.vmem [resolvable:$true] %s186_s8 }
   0x5   :  { %v259_v49 = vmov 1326507024   ;;  %s225_s9 = scalar_lea.vmem %s187_s8, 128  ;;  %p230_p1 = scmp.lt.s32.totalorder %s187_s8, %s187_s8 }
   0x6   :  { %215 = vset.pattern.permute.xlu0 %v251_v3  ;;  %217 = vset.pattern.permute.xlu1 %v252_v4  ;;  %v16_v7 = vand.u32 31, %v11_v6  ;;  %vm44_vm0 = vcmp.ge.s32.totalorder %v11_v6, 32  ;;  %vm57_vm1 = vcmp.ge.s32.totalorder %v11_v6, 64  ;;  %vm65_vm3 = vcmp.ge.s32.totalorder %v11_v6, 96  ;;  %p226_p0 = scmp.ne.s32.totalorder %s187_s8, %s225_s9  ;;  %p231_p2 = scmp.lt.s32.totalorder %s225_s9, %s225_s9 }
   0x7   :  { %53 = vperm.xlu0 %215, %v9_v0   ;;  %69 = vperm.xlu1 %217, %v9_v0  }
   0x8   :  { %v28_v8 = vand.u32 15, %v16_v7  ;;  %vm42_vm2 = vcmp.ge.s32.totalorder %v16_v7, 16  ;;  %p232_p3 = por %p231_p2, %p230_p1 }
   0x9   :  { %v43_v21 = vsel %vm42_vm2, 1.5707964, %v253_v20 }
   0xa   :  { %v36_v9 = vcvt.s32.f32 %v28_v8  ;;  %p233_p4 = pnand %p232_p3, %p226_p0 }
   0xb   :  { %218 = vset.pattern.permute.xlu0 %v252_v4 }
   0xc   :  { %v37_v10 = vmul.f32 0.46051702, %v36_v9 }
   0xe   :  { %v39_v11 = vmul.f32 1.442695, %v37_v10 }
  0x10   :  { %219 = vpow2.f32 %v39_v11 }
  0x1a   :  { %v220_v14 = vpop.eup %219 }
  0x1b   :  { %v41_v16 = vmul.f32 6.2831855, %v220_v14 }
  0x81   :  { %v50_v12 = vpop.permute.xlu0 %49  ;;  %v62_v13 = vpop.permute.xlu1 %61 }
  0x86   :  { %v54_v15 = vpop.permute.xlu0 %53  ;;  %v70_v17 = vpop.permute.xlu1 %69 }
  0x87   :  { %v56_v18 = vsel %vm44_vm0, %v50_v12, %v54_v15 }
  0x88   :  { %v64_v19 = vsel %vm57_vm1, %v62_v13, %v56_v18 }
  0x89   :  { %v72_v22 = vsel %vm65_vm3, %v70_v17, %v64_v19 }
  0x8a   :  { %v73_v23 = vmul.f32 %v72_v22, %v41_v16 }
  0x8c   :  { %v274_v24 = vadd.f32 %v73_v23, %v43_v21 }
  0x8e   :  { %v78_v25 = vand.u32 2139095040, %v274_v24  ;;  %v75_v29 = vand.u32 2147483647, %v274_v24  ;;  %vm77_vm11 = vcmp.lt.s32.totalorder %v274_v24, 0  ;;  %vm167_vm0 = vweird.f32 %v274_v24 }
  0x90   :  { %v79_v26 = vshrl.u32 %v78_v25, 23  ;;  %v82_v33 = vand.u32 8388607, %v75_v29  ;;  %vm76_vm12 = vcmp.le.f32.partialorder %v75_v29, 0.7853982 }
  0x92   :  { %v194_v27 = vadd.s32 4294967169, %v79_v26  ;;  %v83_v51 = vor.u32 8388608, %v82_v33 }
  0x94   :  { %v85_v28 = vadd.s32 1, %v194_v27  ;;  %v123_v1 = vshll.u32 %v83_v51, 8 }
  0x96   :  { %vm86_vm4 = vcmp.gt.s32.totalorder %v85_v28, 0 }
  0x97   :  { %v87_v30 = vsel %vm86_vm4, %v85_v28, 0 }
  0x98   :  { %v89_v31 = vand.u32 31, %v87_v30  ;;  %v88_v34 = vshrl.u32 %v87_v30, 5 }
  0x9a   :  { %v90_v32 = vsub.s32 32, %v89_v31  ;;  %v92_v36 = vshll.u32 %v254_v35, %v89_v31  ;;  %v95_v38 = vshll.u32 %v255_v37, %v89_v31  ;;  %v98_v42 = vshll.u32 %v256_v40, %v89_v31 }
  0x9b   :  { %v101_v45 = vshll.u32 %v257_v43, %v89_v31  ;;  %v104_v48 = vshll.u32 %v258_v46, %v89_v31  ;;  %vm107_vm5 = vcmp.lt.s32.totalorder %v88_v34, 1  ;;  %vm110_vm6 = vcmp.lt.s32.totalorder %v88_v34, 4 }
  0x9c   :  { %v93_v39 = vshrl.u32 %v255_v37, %v90_v32  ;;  %v96_v41 = vshrl.u32 %v256_v40, %v90_v32  ;;  %v99_v44 = vshrl.u32 %v257_v43, %v90_v32  ;;  %v102_v47 = vshrl.u32 %v258_v46, %v90_v32 }
  0x9d   :  { %v105_v50 = vshrl.u32 %v259_v49, %v90_v32  ;;  %v91_v60 = vshrl.u32 %v254_v35, %v90_v32  ;;  %vm109_vm7 = vcmp.lt.s32.totalorder %v88_v34, 3  ;;  %vm108_vm8 = vcmp.lt.s32.totalorder %v88_v34, 2 }
  0x9e   :  { %v94_v52 = vor.u32 %v93_v39, %v92_v36  ;;  %v97_v53 = vor.u32 %v96_v41, %v95_v38  ;;  %v100_v54 = vor.u32 %v99_v44, %v98_v42  ;;  %v103_v55 = vor.u32 %v102_v47, %v101_v45 }
  0x9f   :  { %v106_v56 = vor.u32 %v105_v50, %v104_v48 }
  0xa0   :  { %v112_v57 = vsel %vm110_vm6, %v100_v54, 2102212464  ;;  %v115_v58 = vsel %vm107_vm5, %v94_v52, %v97_v53  ;;  %v119_v59 = vsel %vm107_vm5, %v97_v53, %v100_v54  ;;  %v116_v61 = vsel %vm110_vm6, %v103_v55, 920167782 }
  0xa1   :  { %v120_v62 = vsel %vm110_vm6, %v106_v56, 1326507024  ;;  %v117_v63 = vsel %vm109_vm7, %v100_v54, %v116_v61  ;;  %v111_v2 = vsel %vm107_vm5, %v91_v60, %v94_v52  ;;  %v113_v3 = vsel %vm109_vm7, %v97_v53, %v112_v57 }
  0xa2   :  { %v121_v0 = vsel %vm109_vm7, %v103_v55, %v120_v62  ;;  %v118_v4 = vsel %vm108_vm8, %v115_v58, %v117_v63  ;;  %v114_v10 = vsel %vm108_vm8, %v111_v2, %v113_v3 }
  0xa3   :  { %v122_v5 = vsel %vm108_vm8, %v119_v59, %v121_v0  ;;  %v283_v8 = vmul.u32.u64.low %v123_v1, %v118_v4  ;;  %v284_v9 = vmul.u32.u64.high %v123_v1, %v118_v4, %v283_v8  ;;  %v130_v12 = vmul.u32 %v123_v1, %v114_v10 }
  0xa4   :  { %v280_v6 = vmul.u32.u64.low %v123_v1, %v122_v5  ;;  %v281_v7 = vmul.u32.u64.high %v123_v1, %v122_v5, %v280_v6 }
  0xa5   :  { %v133_v11 = vadd.s32 1, %v284_v9 }
  0xa6   :  { %vm132_vm9 = vc.u32 %v281_v7, %v283_v8  ;;  %v131_v25 = vadd.s32 %v283_v8, %v281_v7 }
  0xa7   :  { %v134_v13 = vsel %vm132_vm9, %v133_v11, %v284_v9 }
  0xa8   :  { %v135_v14 = vadd.s32 %v134_v13, %v130_v12 }
  0xaa   :  { %v136_v15 = vadd.s32 536870912, %v135_v14 }
  0xac   :  { %v137_v16 = vshrl.u32 %v136_v15, 30 }
  0xae   :  { %v138_v17 = vshll.u32 %v137_v16, 30  ;;  %v161_v38 = vsub.s32 4, %v137_v16 }
  0xb0   :  { %v139_v18 = vsub.s32 %v135_v14, %v138_v17  ;;  %v162_v41 = vsel %vm77_vm11, %v161_v38, %v137_v16 }
  0xb1   :  { %v164_v43 = vsel %vm76_vm12, 0, %v162_v41 }
  0xb2   :  { %v141_v19 = vsub.s32 0, %v139_v18  ;;  %v168_v44 = vadd.s32 3, %v164_v43 }
  0xb4   :  { %v195_v20 = vmin.u32 %v141_v19, %v139_v18  ;;  %v169_v45 = vand.u32 3, %v168_v44 }
  0xb6   :  { %v143_v21 = vclz %v195_v20  ;;  %vm174_vm13 = vcmp.eq.s32.totalorder %v169_v45, 2  ;;  %vm171_vm14 = vcmp.eq.s32.totalorder %v169_v45, 0  ;;  %vm170_vm15 = vcmp.lt.s32.totalorder %v169_v45, 2 }
  0xb8   :  { %v196_v22 = vadd.s32 4294967294, %v143_v21 }
  0xba   :  { %vm197_vm10 = vcmp.lt.s32.totalorder %v196_v22, 0 }
  0xbb   :  { %v146_v23 = vsel %vm197_vm10, 0, %v196_v22 }
  0xbc   :  { %v147_v26 = vsub.s32 32, %v146_v23  ;;  %v151_v27 = vsub.s32 4294967266, %v146_v23  ;;  %v148_v28 = vshll.u32 %v139_v18, %v146_v23 }
  0xbe   :  { %v149_v30 = vshrl.u32 %v131_v25, %v147_v26  ;;  %v152_v31 = vadd.s32 127, %v151_v27 }
  0xc0   :  { %v150_v32 = vor.u32 %v149_v30, %v148_v28  ;;  %v153_v33 = vshll.u32 %v152_v31, 23 }
  0xc2   :  { %v154_v34 = vor.u32 4788187, %v153_v33  ;;  %v157_v36 = vcvt.s32.f32 %v150_v32 }
  0xc4   :  { %v155_v35 = vand.u32 2147483647, %v154_v34 }
  0xc6   :  { %v158_v37 = vmul.f32 %v157_v36, %v155_v35 }
  0xc8   :  { %v159_v39 = vxor.u32 2147483648, %v158_v37 }
  0xca   :  { %v160_v40 = vsel %vm77_vm11, %v159_v39, %v158_v37 }
  0xcb   :  { %v163_v42 = vsel %vm76_vm12, %v274_v24, %v160_v40 }
  0xcc   :  { %221 = vcosq.f32 %v163_v42 }
  0xcd   :  { %223 = vsinq.f32 %v163_v42 }
  0xd6   :  { %v222_v46 = vpop.eup %221 }
  0xd7   :  { %v224_v47 = vpop.eup %223  ;;  %v175_v48 = vxor.u32 2147483648, %v222_v46 }
  0xd8   :  { %v172_v49 = vxor.u32 2147483648, %v224_v47 }
  0xd9   :  { %v176_v50 = vsel %vm174_vm13, %v175_v48, %v224_v47 }
  0xda   :  { %v173_v29 = vsel %vm171_vm14, %v222_v46, %v172_v49 }
  0xdb   :  { %v177_v51 = vsel %vm170_vm15, %v173_v29, %v176_v50 }
  0xdc   :  { %v178_v52 = vsel %vm167_vm0, nan, %v177_v51 }
  0xdd   :  { %179 = vst [vmem:[#allocation2] sm:$0xff] %v178_v52 }
  0xde   :  { %236 = shalt.err (!%p233_p4)
}
  0xdf   :  { %s237_s12 = scalar_lea.hbm %s308_s1, 128 }
  0xe0   :  { %p238_p5 = scmp.ne.s32.totalorder %s308_s1, %s237_s12  ;;  %p241_p6 = scmp.lt.u32.totalorder %s237_s12, %s308_s1 }
  0xe2   :  { %p243_p7 = pnand %p241_p6, %p238_p5 }
  0xe4   :  { %246 = shalt.err (!%p243_p7)
}
  0xe5   :  { %189 = dma.vmem_to_hbm [thread:$0]  %s187_s8, 128, %s308_s1, [#allocation3]  }
  0xe6   :  { %247 = dma.done.wait [#allocation3], 128  }
  0xe7   :  { %248 = vsyncadd [#allocation3], 4294967168 }
  0xe8   :  { %193 = vsyncpa [#allocation3], 1 }

</bundles_post_ra>
